<compile_context>
chip_gen: v6e
topology: v6e:2x2x1
jax: 0.10.0
libtpu: 0.0.40
codegen_flags: <defaults>
</compile_context>

<pallas_src>
import jax
import jax.numpy as jnp
from jax.experimental import pallas as pl
from jax.experimental.pallas import tpu as pltpu

LANE = 128
_MAX_TM = 1024                   # no measured roofline gain past 512-1024 rows
_SMALL_PROBLEM_ELEMS = 1 << 20   # below this, plain XLA beats pallas launch overhead


def _round_up(x, m):
    return ((x + m - 1) // m) * m


def _span_cls_kernel(x_ref, w_ref, o_ref):
    """One M-tile of: out = x @ w_comb (folded, lane-padded weight)."""
    o_ref[...] = jnp.dot(
        x_ref[...], w_ref[...], preferred_element_type=jnp.float32
    ).astype(o_ref.dtype)


def _vmem_capacity_bytes():
    try:
        return int(pltpu.get_tpu_info().vmem_capacity_bytes)
    except Exception:
        return 64 * 1024 * 1024  # v7x per-TC physical VMEM (smallest of v5e/v6e/v7x)


def _select_tile(m, hidden, c_pad, itemsize, sublane):
    """Largest sublane-aligned M-tile that fits a conservative VMEM budget."""
    budget = (_vmem_capacity_bytes() * 3) // 4       # headroom for internal scratch
    w_bytes = hidden * c_pad * itemsize              # folded weight
    per_row = (2 * hidden + 2 * c_pad) * itemsize    # dbl-buffered x tile + out tile
    avail = max(budget - 2 * w_bytes, per_row * sublane)
    tm = (avail // per_row) // sublane * sublane
    tm = max(sublane, min(tm, _MAX_TM))
    # clamp to the actual data
    tm = min(tm, _round_up(m, sublane))
    # ensure >= 2 grid steps when there is enough work: the "parallel" axis is
    # sharded across v7x's 2 TensorCores; a 1-step grid leaves one core idle
    # (harmless on single-TC v5e/v6e, one extra ~0.35us step at worst).
    if m >= 2 * sublane:
        half = -(-m // 2)
        tm = min(tm, _round_up(half, sublane))
    return max(tm, sublane)


def wivio_cls_init(w1, w2, *, dtype=None):
    """Fold the two bias-free Linears into one lane-padded weight. Do this ONCE.

    w1: [H, H] = head_1.weight, w2: [C, H] = head_2.weight (PyTorch layout).
    Returns (w_comb_padded [H, round_up(C, 128)], n_class).
    """
    if dtype is None:
        dtype = w1.dtype
    n_class = w2.shape[0]
    # w_comb[h, c] = sum_k w1[k, h] * w2[c, k] == ((w2 @ w1).T)[h, c]
    w_comb = jax.lax.dot_general(
        w1, w2, dimension_numbers=(((0,), (1,)), ((), ())),
        preferred_element_type=jnp.float32,
    ).astype(dtype)                                    # [H, C]
    c_pad = _round_up(n_class, LANE)
    if c_pad != n_class:
        # lane-dense output -> unmasked vst stores in the kernel
        w_comb = jnp.pad(w_comb, ((0, 0), (0, c_pad - n_class)))
    return w_comb, n_class


def wivio_cls_apply(features, w_comb_pad, n_class, *, io_dtype=None,
                    use_pallas=None, tm=None):
    """features: [..., H]; w_comb_pad: [H, c_pad] from wivio_cls_init.

    Returns {'label': [..., n_class]} matching WiVio_cls.forward.
    """
    orig_shape = features.shape
    hidden = orig_shape[-1]
    c_pad = w_comb_pad.shape[1]
    out_dtype = features.dtype

    x2d = features.reshape(-1, hidden)                 # [M, H]
    m = x2d.shape[0]

    if use_pallas is None:
        use_pallas = m * hidden >= _SMALL_PROBLEM_ELEMS
    if not use_pallas:
        # pallas_call launch/pipeline overhead dwarfs tiny matmuls.
        out2d = jnp.dot(x2d.astype(w_comb_pad.dtype), w_comb_pad,
                        preferred_element_type=jnp.float32).astype(out_dtype)
        return {"label": out2d[:, :n_class].reshape(*orig_shape[:-1], n_class)}

    if io_dtype is not None:
        # bf16 I/O path: halves bytes on x read / output write; MXU-native on
        # v5e/v6e/v7x and the dot still accumulates in f32.
        x2d = x2d.astype(io_dtype)
        w = w_comb_pad.astype(io_dtype)
    else:
        w = w_comb_pad.astype(x2d.dtype)

    itemsize = jnp.dtype(x2d.dtype).itemsize
    sublane = 8 * (4 // itemsize)                      # 8 rows f32, 16 rows bf16
    if tm is None:
        tm = _select_tile(m, hidden, c_pad, itemsize, sublane)
    tm = max(sublane, _round_up(tm, sublane))

    grid = (pl.cdiv(m, tm),)
    # No padding of x / output rows: Pallas masks the ragged edge block, and any
    # garbage it reads can only influence output rows that do not exist in the
    # (m, c_pad) output array.

    vmem_used = (2 * tm * hidden + 2 * hidden * c_pad + 2 * tm * c_pad) * itemsize
    vmem_limit = min(_vmem_capacity_bytes(),
                     max(vmem_used + (8 << 20), 32 << 20))

    cost = pl.CostEstimate(
        flops=2 * m * hidden * c_pad,
        transcendentals=0,
        bytes_accessed=(m * hidden + hidden * c_pad + m * c_pad) * itemsize,
    )

    def _call(single_buffer_weight):
        if single_buffer_weight:
            # constant index_map -> single buffer; double-buffering the weight
            # only burns VMEM that is better spent on a larger M tile.
            w_spec = pl.BlockSpec((hidden, c_pad), lambda i: (0, 0),
                                  pipeline_mode=pl.Buffered(1))
        else:
            w_spec = pl.BlockSpec((hidden, c_pad), lambda i: (0, 0))
        return pl.pallas_call(
            _span_cls_kernel,
            out_shape=jax.ShapeDtypeStruct((m, c_pad), out_dtype),
            grid_spec=pltpu.PrefetchScalarGridSpec(
                num_scalar_prefetch=0,
                grid=grid,
                in_specs=[
                    pl.BlockSpec((tm, hidden), lambda i: (i, 0)),   # x tile
                    w_spec,                                         # folded weight
                ],
                out_specs=pl.BlockSpec((tm, c_pad), lambda i: (i, 0)),
            ),
            compiler_params=pltpu.CompilerParams(
                dimension_semantics=("parallel",),
                vmem_limit_bytes=int(vmem_limit),
            ),
            cost_estimate=cost,
        )(x2d, w)

    try:
        out2d = _call(True)
    except Exception:
        out2d = _call(False)   # fall back to default double-buffered weight spec

    # TODO(synk): downstream consumers could take the lane-padded [.., 128]
    # output directly and skip this (small) extra pass over the output.
    label = out2d[:, :n_class].reshape(*orig_shape[:-1], n_class)
    return {"label": label}


def wivio_cls_forward(features, w1, w2, **kwargs):
    """Convenience wrapper matching WiVio_cls.forward exactly.

    Prefer wivio_cls_init (once) + wivio_cls_apply (per step) so the weight fold
    does not run on every forward call.
    """
    w_comb_pad, n_class = wivio_cls_init(w1, w2, dtype=features.dtype)
    return wivio_cls_apply(features, w_comb_pad, n_class, **kwargs)


def xavier_uniform(key, shape, dtype=jnp.float32):
    """Matches torch.nn.init.xavier_uniform_ for a 2-D Linear weight."""
    fan_out, fan_in = shape
    bound = (6.0 / (fan_in + fan_out)) ** 0.5
    return jax.random.uniform(key, shape, dtype, minval=-bound, maxval=bound)


if __name__ == "__main__":
    # Small shapes consistent with the module: batch=2, seq=8, hidden=32,
    # label_n_classes=7 (WiVio_cls_config.label_n_classes).
    batch, seq, hidden, n_class = 2, 8, 32, 7

    key = jax.random.PRNGKey(0)
    k_feat, k_w1, k_w2 = jax.random.split(key, 3)

    features = jax.random.normal(k_feat, (batch, seq, hidden), jnp.float32)
    w1 = xavier_uniform(k_w1, (hidden, hidden))   # head_1.weight  [H, H]
    w2 = xavier_uniform(k_w2, (n_class, hidden))  # head_2.weight  [C, H]

    # init-time fold (done once) ...
    w_comb_pad, n_cls = wivio_cls_init(w1, w2, dtype=features.dtype)
    w_comb_pad = jax.block_until_ready(w_comb_pad)

    # ... then the per-step forward; force the Pallas path at this demo size.
    out = wivio_cls_apply(features, w_comb_pad, n_cls, use_pallas=True)
    label = jax.block_until_ready(out["label"])

    # Pure-JAX reference of the two bias-free Linears (un-folded order).
    ref = (features @ w1.T) @ w2.T
    assert label.shape == (batch, seq, n_class)
    assert jnp.allclose(label, ref, atol=1e-4, rtol=1e-4)

    print("KERNEL_OK")
</pallas_src>

<mosaic_0001>
module attributes {stable_mosaic.version = 11 : i64} {
  func.func @_span_cls_kernel(%arg0: i32, %arg1: memref<8x32xf32, #tpu.memory_space<vmem>>, %arg2: memref<32x128xf32, #tpu.memory_space<vmem>>, %arg3: memref<8x128xf32, #tpu.memory_space<vmem>>) attributes {dimension_semantics = [#tpu.dimension_semantics<parallel>], iteration_bounds = array<i64: 2>, scalar_prefetch = 0 : i64, scratch_operands = 0 : i64, tpu.core_type = #tpu.core_type<tc>, window_params = [{transform_indices = @transform_0, window_bounds = array<i64: 8, 32>}, {pipeline_mode = #tpu.pipeline_mode<synchronous>, transform_indices = @transform_1, window_bounds = array<i64: 32, 128>}, {transform_indices = @transform_2, window_bounds = array<i64: 8, 128>}]} {
    %c0 = arith.constant 0 : index
    %c0_0 = arith.constant 0 : index
    %0 = vector.load %arg1[%c0, %c0_0] : memref<8x32xf32, #tpu.memory_space<vmem>>, vector<8x32xf32>
    %c0_1 = arith.constant 0 : index
    %c0_2 = arith.constant 0 : index
    %1 = vector.load %arg2[%c0_1, %c0_2] : memref<32x128xf32, #tpu.memory_space<vmem>>, vector<32x128xf32>
    %cst = arith.constant dense<0.000000e+00> : vector<8x128xf32>
    %2 = tpu.matmul %0, %1, %cst {dimension_numbers = #tpu.dot_dimension_numbers<[1], [0], [0], [1], [0, 0, 1, 1], [], []>} : vector<8x32xf32>, vector<32x128xf32>, vector<8x128xf32> -> vector<8x128xf32>
    %c0_3 = arith.constant 0 : index
    %c0_4 = arith.constant 0 : index
    %3 = vector.load %arg3[%c0_3, %c0_4] : memref<8x128xf32, #tpu.memory_space<vmem>>, vector<8x128xf32>
    tpu.vector_store %arg3[%c0_3, %c0_4], %2 {strides = array<i32>} : memref<8x128xf32, #tpu.memory_space<vmem>>, vector<8x128xf32>,
    return
  }
  func.func @transform_0(%arg0: i32) -> (i32, i32) {
    %c0_i32 = arith.constant 0 : i32
    %c0_i32_0 = arith.constant 0 : i32
    return %arg0, %c0_i32 : i32, i32
  }
  func.func @transform_1(%arg0: i32) -> (i32, i32) {
    %c0_i32 = arith.constant 0 : i32
    %c0_i32_0 = arith.constant 0 : i32
    %c0_i32_1 = arith.constant 0 : i32
    return %c0_i32, %c0_i32_0 : i32, i32
  }
  func.func @transform_2(%arg0: i32) -> (i32, i32) {
    %c0_i32 = arith.constant 0 : i32
    %c0_i32_0 = arith.constant 0 : i32
    return %arg0, %c0_i32 : i32, i32
  }
}

module attributes {stable_mosaic.version = 11 : i64} {
  func.func @_span_cls_kernel(%arg0: i32, %arg1: memref<8x32xf32, #tpu.memory_space<vmem>>, %arg2: memref<32x128xf32, #tpu.memory_space<vmem>>, %arg3: memref<8x128xf32, #tpu.memory_space<vmem>>) attributes {dimension_semantics = [#tpu.dimension_semantics<parallel>], iteration_bounds = array<i64: 2>, scalar_prefetch = 0 : i64, scratch_operands = 0 : i64, tpu.core_type = #tpu.core_type<tc>, window_params = [{transform_indices = @transform_0, window_bounds = array<i64: 8, 32>}, {pipeline_mode = #tpu.pipeline_mode<synchronous>, transform_indices = @transform_1, window_bounds = array<i64: 32, 128>}, {transform_indices = @transform_2, window_bounds = array<i64: 8, 128>}]} {
    %c0 = arith.constant 0 : index
    %c0_0 = arith.constant 0 : index
    %0 = vector.load %arg1[%c0, %c0_0] : memref<8x32xf32, #tpu.memory_space<vmem>>, vector<8x32xf32>
    %c0_1 = arith.constant 0 : index
    %c0_2 = arith.constant 0 : index
    %1 = vector.load %arg2[%c0_1, %c0_2] : memref<32x128xf32, #tpu.memory_space<vmem>>, vector<32x128xf32>
    %cst = arith.constant dense<0.000000e+00> : vector<8x128xf32>
    %2 = tpu.matmul %0, %1, %cst {dimension_numbers = #tpu.dot_dimension_numbers<[1], [0], [0], [1], [0, 0, 1, 1], [], []>} : vector<8x32xf32>, vector<32x128xf32>, vector<8x128xf32> -> vector<8x128xf32>
    %c0_3 = arith.constant 0 : index
    %c0_4 = arith.constant 0 : index
    %3 = vector.load %arg3[%c0_3, %c0_4] : memref<8x128xf32, #tpu.memory_space<vmem>>, vector<8x128xf32>
    tpu.vector_store %arg3[%c0_3, %c0_4], %2 {strides = array<i32>} : memref<8x128xf32, #tpu.memory_space<vmem>>, vector<8x128xf32>,
    return
  }
  func.func @transform_0(%arg0: i32) -> (i32, i32) {
    %c0_i32 = arith.constant 0 : i32
    %c0_i32_0 = arith.constant 0 : i32
    return %arg0, %c0_i32 : i32, i32
  }
  func.func @transform_1(%arg0: i32) -> (i32, i32) {
    %c0_i32 = arith.constant 0 : i32
    %c0_i32_0 = arith.constant 0 : i32
    %c0_i32_1 = arith.constant 0 : i32
    return %c0_i32, %c0_i32_0 : i32, i32
  }
  func.func @transform_2(%arg0: i32) -> (i32, i32) {
    %c0_i32 = arith.constant 0 : i32
    %c0_i32_0 = arith.constant 0 : i32
    return %arg0, %c0_i32 : i32, i32
  }
}

</mosaic_0001>

<bundles_post_ra>
// kernel: tpu_custom_call.1
= control target key start
LH: loop header
LB: loop body
LE: loop exit
PB: predicated region body
PF: predicated region fallthrough
CT: control target
= control target key end

     0   :  { %7 = vsyncpa [#allocation3], 0  ;;  %s752_s0 = inlined_call_operand.hbm [shape: f32[16,32], index: 0, kind: input, shape index: {}]   ;;  %s753_s1 = inlined_call_operand.hbm [shape: f32[32,128], index: 1, kind: input, shape index: {}]   ;;  %s754_s2 = inlined_call_operand.hbm [shape: f32[16,128], index: 2, kind: output, shape index: {}]  }
   0x1   :  { %9 = vsyncpa [#allocation3 + $0x1], 0 }
   0x2   :  { %10 = vsyncpa [#allocation6], 0 }
   0x3   :  { %11 = vsyncpa [#allocation4], 0 }
   0x4   :  { %13 = vsyncpa [#allocation4 + $0x1], 0  ;;  %s586_s9 = smov 0   ;;  %s588_s10 = smov 0  }
   0x5   :  { %s590_s11 = smov 0   ;;  %s592_s12 = smov 0  }
   0x6 LB: > { %s607_s13 = sadd.s32 4294967295, %s562_s12   ;;  %s348_s14 = sadd.s32 4294967294, %s562_s12   ;;  %s562_s12 = sphi %s592_s12, %s776_s12   ;;  %s558_s11 = sphi %s590_s11, %s775_s11   ;;  %s554_s10 = sphi %s588_s10, %s774_s10   ;;  %s550_s9 = sphi %s586_s9, %s773_s9  }
   0x7   : > { %p39_p0 = scmp.ne.s32.totalorder %s554_s10, %s550_s9  ;;  %p755_p1 = scmp.eq.s32.totalorder %s607_s13, 0 }
   0x8   : > { %p90_p3 = scmp.eq.s32.totalorder %s348_s14, 1  ;;  %p349_p5 = scmp.ge.s32.totalorder %s562_s12, 1 }
   0x9   : > { %p616_p4 = por %p755_p1, %p39_p0  ;;  %p97_p7 = scmp.lt.s32.totalorder %s562_s12, 3 }
   0xa   : > { %p621_p6 = por %p90_p3, %p39_p0  ;;  %s564_s18 = smov [#allocation5]  }
   0xb   : > { %s759_s15 = scalar_select %p616_p4, 1, 0 }
   0xc   : > { %s760_s16 = scalar_select %p621_p6, 1, 0 }
   0xd   : > { %p626_p8 = pnand %p349_p5, %p97_p7  ;;  %s109_s19 = sshll.u32 %s564_s18, 4  ;;  %s110_s19 = int_to_ptr.vmem [resolvable:$true] %s109_s19 }
   0xe   : > { %s640_s21 = sadd.s32 1, %s562_s12   ;;  %s26_s22 = sadd.s32 1, %s558_s11 }
   0xf   : > { %s761_s17 = scalar_select %p626_p8, 1, 0 }
  0x10   : > { %p387_p9 = pneg %p626_p8  ;;  %s23_s23 = ssub.s32 %s562_s12, %s640_s21 }
  0x11   : > { %s451_s24 = scalar_lea.vmem %s110_s19, 512  ;;  %p459_p5 = scmp.lt.s32.totalorder %s110_s19, %s110_s19 }
  0x12   : > { %p635_p11 = pnand %p387_p9, %p755_p1  ;;  %p452_p13 = scmp.ne.s32.totalorder %s110_s19, %s451_s24 }
  0x13   : > { %p460_p7 = scmp.lt.s32.totalorder %s451_s24, %s451_s24 }
  0x14   : > { %p442_p12 = pneg %p635_p11 }
  0x15   : > { %p461_p10 = por %p460_p7, %p459_p5 }
  0x16   : > { %p454_p0 = pnand %p452_p13, %p442_p12 }
  0x18   : > { %p455_p3 = pneg %p454_p0 }
  0x1a   : > { %p462_p2 = pnand %p461_p10, %p455_p3 }
  0x1c   : > { %465 = shalt.err (!%p462_p2)
}
  0x1d   : > { %s565_s25 = smov 128   ;;  %s566_s26 = smov 8  }
  0x1e   : > { %390 = dma.hbm_to_vmem [thread:$0]  (!%p635_p11), %s753_s1, 512, %s110_s19, [#allocation6], %s565_s25, %s565_s25, %s566_s26  }
  0x1f   : > { %p24_p9 = scmp.eq.s32.totalorder %s23_s23, 0  ;;  %p33_p12 = scmp.ne.s32.totalorder %s558_s11, %s554_s10 }
  0x20   : > { %p34_p10 = scmp.eq.s32.totalorder %s562_s12, 0  ;;  %p400_p2 = scmp.lt.s32.totalorder %s562_s12, 2 }
  0x21   : > { %s657_s29 = scalar_select %p24_p9, %s558_s11, %s26_s22  }
  0x22   : > { %p35_p13 = por %p34_p10, %p33_p12  ;;  %p763_p0 = scmp.eq.s32.totalorder %s607_s13, 1 }
  0x23   : > { %s123_s3 = sand.u32 1, %s558_s11   ;;  %s353_s4 = sshll.u32 %s562_s12, 7 }
  0x24   : > { %p661_p3 = por %p763_p0, %p33_p12  ;;  %s352_s5 = sshll.u32 %s123_s3, 3 }
  0x25   : > { %s670_s8 = scalar_lea.hbm %s752_s0, %s353_s4  ;;  %s127_s14 = scalar_lea.vmem [#allocation2], %s352_s5 }
  0x26   : > { %s764_s30 = scalar_select %p661_p3, 1, 0 }
  0x27   : > { %s134_s18 = sshll.u32 %s127_s14, 4  ;;  %p672_p11 = pnand %p400_p2, %p35_p13  ;;  %s135_s18 = int_to_ptr.vmem [resolvable:$true] %s134_s18 }
  0x28   : > { %s124_s20 = scalar_lea.sflag [#allocation3], %s123_s3  ;;  %s466_s22 = scalar_lea.hbm %s670_s8, 128 }
  0x29   : > { %p467_p5 = scmp.ne.s32.totalorder %s670_s8, %s466_s22  ;;  %p468_p7 = pneg %p672_p11 }
  0x2a   : > { %s471_s25 = scalar_lea.hbm %s752_s0, 256  ;;  %p472_p10 = scmp.lt.s32.totalorder %s670_s8, %s752_s0 }
  0x2b   : > { %p469_p9 = pnand %p468_p7, %p467_p5  ;;  %p473_p2 = scmp.lt.s32.totalorder %s471_s25, %s466_s22 }
  0x2d   : > { %p470_p12 = pneg %p469_p9  ;;  %p474_p13 = por %p473_p2, %p472_p10 }
  0x2f   : > { %p475_p0 = pnand %p474_p13, %p470_p12 }
  0x31   : > { %478 = shalt.err (!%p475_p0)
}
  0x32   : > { %s479_s28 = scalar_lea.vmem %s135_s18, 128  ;;  %s567_s3 = smov [#allocation2]  }
  0x33   : > { %p480_p1 = scmp.ne.s32.totalorder %s135_s18, %s479_s28  ;;  %s484_s4 = sshll.u32 %s567_s3, 4  ;;  %s485_s4 = int_to_ptr.vmem [resolvable:$false] %s484_s4 }
  0x34   : > { %s486_s5 = scalar_lea.vmem %s485_s4, 256  ;;  %p487_p5 = scmp.lt.s32.totalorder %s135_s18, %s485_s4 }
  0x35   : > { %p482_p6 = pnand %p480_p1, %p468_p7  ;;  %p488_p9 = scmp.lt.s32.totalorder %s486_s5, %s479_s28 }
  0x37   : > { %p483_p3 = pneg %p482_p6  ;;  %p489_p4 = por %p488_p9, %p487_p5 }
  0x39   : > { %p490_p8 = pnand %p489_p4, %p483_p3 }
  0x3b   : > { %493 = shalt.err (!%p490_p8)
}
  0x3c   : > { %394 = dma.hbm_to_vmem [thread:$0]  (!%p672_p11), %s670_s8, 128, %s135_s18, %s124_s20  }
  0x3d   : > { %p766_p12 = scmp.ne.s32.totalorder %s761_s17, 0 }
  0x3e   : > { %s693_s6 = sand.u32 (!%p766_p12), 1, %s554_s10   ;;  %p767_p1 = scmp.ne.s32.totalorder (!%p766_p12), %s759_s15, 0 }
  0x3f   : > { %143 = sbr.rel (%p766_p12) target bundleno = 288 (0x120), region = 28  ;;  %s355_s7 = sshll.u32 (!%p766_p12), %s693_s6, 3 }
  0x40   : > { %s146_s14 = scalar_lea.sflag (!%p766_p12), [#allocation3], %s693_s6  ;;  %s149_s22 = scalar_lea.vmem (!%p766_p12), [#allocation2], %s355_s7 }
  0x44   : > { %537 = dma.done.wait (%p767_p1), %s146_s14, 128  }
  0x45   : > { %539 = vsyncadd (%p767_p1), %s146_s14, 4294967168  ;;  %p768_p4 = scmp.eq.s32.totalorder %s607_s13, 0 }
  0x47   : > { %541 = dma.done.wait (%p768_p4), [#allocation6], 512   ;;  %p769_p6 = pmov %p768_p4 }
  0x48   : > { %v568_v0 = vmov 0.0   ;;  %vm569_vm0 = vmmov 0   ;;  %v178_v1 = vld [vmem:[#allocation5 + $0x18] sm:$0xff]  ;;  %v177_v2 = vld [vmem:[#allocation5 + $0x10] sm:$0xff]  ;;  %v176_v3 = vld [vmem:[#allocation5 + $0x8] sm:$0xff]  ;;  %vm179_vm1 = vcmask 261120  }
  0x49   : > { %543 = vsyncadd (%p769_p6), [#allocation6], 4294966784  ;;  %368 = vmatprep.subr.mxu0 %v568_v0  ;;  %376 = vmatprep.mubr.msk.f32.mxu0 %vm569_vm0, %v568_v0  ;;  %v175_v4 = vld [vmem:[#allocation5] sm:$0xff]  ;;  %v174_v5 = vld [vmem:[%s149_s22] sm:$0xff]  ;;  %s173_s15 = scalar_lea.vmem [#allocation7], %s355_s7  ;;  %s360_s8 = sshll.u32 %s607_s13, 7 }
  0x4a   : > { %369 = vmatpush3.msra.mxu0 %v178_v1  ;;  %s268_s17 = sshll.u32 %s173_s15, 4  ;;  %s711_s20 = scalar_lea.hbm %s754_s2, %s360_s8  ;;  %s706_s17 = int_to_ptr.vmem [resolvable:$true] %s268_s17 }
  0x4b   : > { %370 = vmatprep.subr.mxu0 %v568_v0  ;;  %s255_s23 = scalar_lea.sflag [#allocation4], %s693_s6  ;;  %s494_s24 = scalar_lea.vmem %s706_s17, 128 }
  0x4c   : > { %371 = vmatpush3.msra.mxu0 %v177_v2  ;;  %p495_p8 = scmp.ne.s32.totalorder %s706_s17, %s494_s24  ;;  %p770_p3 = scmp.ne.s32.totalorder %s764_s30, 0 }
  0x4d   : > { %372 = vmatprep.subr.mxu0 %v568_v0  ;;  %s570_s13 = smov [#allocation7]  }
  0x4e   : > { %373 = vmatpush3.msra.mxu0 %v176_v3  ;;  %p496_p11 = pnand %p495_p8, %p770_p3  ;;  %s498_s25 = sshll.u32 %s570_s13, 4  ;;  %s499_s25 = int_to_ptr.vmem [resolvable:$false] %s498_s25 }
  0x4f   : > { %374 = vmatprep.subr.mxu0 %v568_v0  ;;  %s500_s26 = scalar_lea.vmem %s499_s25, 256  ;;  %p501_p10 = scmp.lt.s32.totalorder %s706_s17, %s499_s25 }
  0x50   : > { %375 = vmatpush3.msra.mxu0 %v175_v4  ;;  %p497_p7 = pneg %p496_p11  ;;  %p502_p2 = scmp.lt.s32.totalorder %s500_s26, %s494_s24 }
  0x51   : > { %377 = vmatmul.mubr.msk.f32.vlgmr.msra.gmra.mxu0 %vm179_vm1, %v174_v5 }
  0x52   : > { %p503_p13 = por %p502_p2, %p501_p10 }
  0x54   : > { %p504_p0 = pnand %p503_p13, %p497_p7 }
 0x111   : > { %v249_v6 = vpop.f32.mrf.mxu0 }
 0x112   : > { %253 = vst [vmem:[%s173_s15] sm:$0xff] %v249_v6 }
 0x113   : > { %v378_v7 = vpop.f32.mrf.mxu0 }
 0x114   : > { %507 = shalt.err (!%p504_p0)
}
 0x115   : > { %s508_s27 = scalar_lea.hbm %s711_s20, 128  ;;  %s512_s4 = scalar_lea.hbm %s754_s2, 256 }
 0x116   : > { %p509_p5 = scmp.ne.s32.totalorder %s711_s20, %s508_s27  ;;  %p513_p1 = scmp.lt.s32.totalorder %s711_s20, %s754_s2 }
 0x117   : > { %p514_p4 = scmp.lt.s32.totalorder %s512_s4, %s508_s27 }
 0x118   : > { %p510_p9 = pnand %p509_p5, %p770_p3 }
 0x119   : > { %p515_p6 = por %p514_p4, %p513_p1 }
 0x11a   : > { %p511_p12 = pneg %p510_p9 }
 0x11c   : > { %p516_p8 = pnand %p515_p6, %p511_p12 }
 0x11e   : > { %519 = shalt.err (!%p516_p8)
}
 0x11f   : > { %385 = dma.vmem_to_hbm [thread:$0]  (%p770_p3), %s706_s17, 128, %s711_s20, %s255_s23  }
 0x120 PF: > { %s280_s7 = sand.u32 1, %s550_s9   ;;  %p771_p11 = scmp.ne.s32.totalorder %s760_s16, 0 }
 0x121   : > { %p772_p7 = scmp.ge.s32.totalorder %s562_s12, 2  ;;  %s281_s14 = scalar_lea.sflag [#allocation4], %s280_s7 }
 0x123   : > { %p396_p10 = pnand %p772_p7, %p771_p11 }
 0x125   : > { %p397_p2 = pneg %p396_p10 }
 0x127   : > { %545 = dma.done.wait (%p397_p2), %s281_s14, 128  }
 0x128   : > { %547 = vsyncadd (%p397_p2), %s281_s14, 4294967168  ;;  %p16_p13 = scmp.ge.s32.totalorder %s640_s21, 4   ;;  %s773_s9 = smov %s554_s10 }
 0x129   : > { %s774_s10 = smov %s558_s11  ;;  %s775_s11 = smov %s657_s29 }
 0x12a   : > { %s776_s12 = smov %s640_s21  ;;  %18 = sbr.rel (!%p16_p13) target bundleno = 6 (0x6), region = 77 }
 0x12f   :  { %286 = vsyncpa [#allocation3], 1 }
 0x130   :  { %288 = vsyncpa [#allocation3 + $0x1], 1 }
 0x131   :  { %289 = vsyncpa [#allocation6], 1 }
 0x132   :  { %290 = vsyncpa [#allocation4], 1 }
 0x133   :  { %292 = vsyncpa [#allocation4 + $0x1], 1 }

// kernel: tpu_custom_call.1
= control target key start
LH: loop header
LB: loop body
LE: loop exit
PB: predicated region body
PF: predicated region fallthrough
CT: control target
= control target key end

     0   :  { %7 = vsyncpa [#allocation3], 0  ;;  %s752_s0 = inlined_call_operand.hbm [shape: f32[16,32], index: 0, kind: input, shape index: {}]   ;;  %s753_s1 = inlined_call_operand.hbm [shape: f32[32,128], index: 1, kind: input, shape index: {}]   ;;  %s754_s2 = inlined_call_operand.hbm [shape: f32[16,128], index: 2, kind: output, shape index: {}]  }
   0x1   :  { %9 = vsyncpa [#allocation3 + $0x1], 0 }
   0x2   :  { %10 = vsyncpa [#allocation6], 0 }
   0x3   :  { %11 = vsyncpa [#allocation4], 0 }
   0x4   :  { %13 = vsyncpa [#allocation4 + $0x1], 0  ;;  %s586_s9 = smov 0   ;;  %s588_s10 = smov 0  }
   0x5   :  { %s590_s11 = smov 0   ;;  %s592_s12 = smov 0  }
   0x6 LB: > { %s607_s13 = sadd.s32 4294967295, %s562_s12   ;;  %s348_s14 = sadd.s32 4294967294, %s562_s12   ;;  %s562_s12 = sphi %s592_s12, %s776_s12   ;;  %s558_s11 = sphi %s590_s11, %s775_s11   ;;  %s554_s10 = sphi %s588_s10, %s774_s10   ;;  %s550_s9 = sphi %s586_s9, %s773_s9  }
   0x7   : > { %p39_p0 = scmp.ne.s32.totalorder %s554_s10, %s550_s9  ;;  %p755_p1 = scmp.eq.s32.totalorder %s607_s13, 0 }
   0x8   : > { %p90_p3 = scmp.eq.s32.totalorder %s348_s14, 1  ;;  %p349_p5 = scmp.ge.s32.totalorder %s562_s12, 1 }
   0x9   : > { %p616_p4 = por %p755_p1, %p39_p0  ;;  %p97_p7 = scmp.lt.s32.totalorder %s562_s12, 3 }
   0xa   : > { %p621_p6 = por %p90_p3, %p39_p0  ;;  %s564_s18 = smov [#allocation5]  }
   0xb   : > { %s759_s15 = scalar_select %p616_p4, 1, 0 }
   0xc   : > { %s760_s16 = scalar_select %p621_p6, 1, 0 }
   0xd   : > { %p626_p8 = pnand %p349_p5, %p97_p7  ;;  %s109_s19 = sshll.u32 %s564_s18, 4  ;;  %s110_s19 = int_to_ptr.vmem [resolvable:$true] %s109_s19 }
   0xe   : > { %s640_s21 = sadd.s32 1, %s562_s12   ;;  %s26_s22 = sadd.s32 1, %s558_s11 }
   0xf   : > { %s761_s17 = scalar_select %p626_p8, 1, 0 }
  0x10   : > { %p387_p9 = pneg %p626_p8  ;;  %s23_s23 = ssub.s32 %s562_s12, %s640_s21 }
  0x11   : > { %s451_s24 = scalar_lea.vmem %s110_s19, 512  ;;  %p459_p5 = scmp.lt.s32.totalorder %s110_s19, %s110_s19 }
  0x12   : > { %p635_p11 = pnand %p387_p9, %p755_p1  ;;  %p452_p13 = scmp.ne.s32.totalorder %s110_s19, %s451_s24 }
  0x13   : > { %p460_p7 = scmp.lt.s32.totalorder %s451_s24, %s451_s24 }
  0x14   : > { %p442_p12 = pneg %p635_p11 }
  0x15   : > { %p461_p10 = por %p460_p7, %p459_p5 }
  0x16   : > { %p454_p0 = pnand %p452_p13, %p442_p12 }
  0x18   : > { %p455_p3 = pneg %p454_p0 }
  0x1a   : > { %p462_p2 = pnand %p461_p10, %p455_p3 }
  0x1c   : > { %465 = shalt.err (!%p462_p2)
}
  0x1d   : > { %s565_s25 = smov 128   ;;  %s566_s26 = smov 8  }
  0x1e   : > { %390 = dma.hbm_to_vmem [thread:$0]  (!%p635_p11), %s753_s1, 512, %s110_s19, [#allocation6], %s565_s25, %s565_s25, %s566_s26  }
  0x1f   : > { %p24_p9 = scmp.eq.s32.totalorder %s23_s23, 0  ;;  %p33_p12 = scmp.ne.s32.totalorder %s558_s11, %s554_s10 }
  0x20   : > { %p34_p10 = scmp.eq.s32.totalorder %s562_s12, 0  ;;  %p400_p2 = scmp.lt.s32.totalorder %s562_s12, 2 }
  0x21   : > { %s657_s29 = scalar_select %p24_p9, %s558_s11, %s26_s22  }
  0x22   : > { %p35_p13 = por %p34_p10, %p33_p12  ;;  %p763_p0 = scmp.eq.s32.totalorder %s607_s13, 1 }
  0x23   : > { %s123_s3 = sand.u32 1, %s558_s11   ;;  %s353_s4 = sshll.u32 %s562_s12, 7 }
  0x24   : > { %p661_p3 = por %p763_p0, %p33_p12  ;;  %s352_s5 = sshll.u32 %s123_s3, 3 }
  0x25   : > { %s670_s8 = scalar_lea.hbm %s752_s0, %s353_s4  ;;  %s127_s14 = scalar_lea.vmem [#allocation2], %s352_s5 }
  0x26   : > { %s764_s30 = scalar_select %p661_p3, 1, 0 }
  0x27   : > { %s134_s18 = sshll.u32 %s127_s14, 4  ;;  %p672_p11 = pnand %p400_p2, %p35_p13  ;;  %s135_s18 = int_to_ptr.vmem [resolvable:$true] %s134_s18 }
  0x28   : > { %s124_s20 = scalar_lea.sflag [#allocation3], %s123_s3  ;;  %s466_s22 = scalar_lea.hbm %s670_s8, 128 }
  0x29   : > { %p467_p5 = scmp.ne.s32.totalorder %s670_s8, %s466_s22  ;;  %p468_p7 = pneg %p672_p11 }
  0x2a   : > { %s471_s25 = scalar_lea.hbm %s752_s0, 256  ;;  %p472_p10 = scmp.lt.s32.totalorder %s670_s8, %s752_s0 }
  0x2b   : > { %p469_p9 = pnand %p468_p7, %p467_p5  ;;  %p473_p2 = scmp.lt.s32.totalorder %s471_s25, %s466_s22 }
  0x2d   : > { %p470_p12 = pneg %p469_p9  ;;  %p474_p13 = por %p473_p2, %p472_p10 }
  0x2f   : > { %p475_p0 = pnand %p474_p13, %p470_p12 }
  0x31   : > { %478 = shalt.err (!%p475_p0)
}
  0x32   : > { %s479_s28 = scalar_lea.vmem %s135_s18, 128  ;;  %s567_s3 = smov [#allocation2]  }
  0x33   : > { %p480_p1 = scmp.ne.s32.totalorder %s135_s18, %s479_s28  ;;  %s484_s4 = sshll.u32 %s567_s3, 4  ;;  %s485_s4 = int_to_ptr.vmem [resolvable:$false] %s484_s4 }
  0x34   : > { %s486_s5 = scalar_lea.vmem %s485_s4, 256  ;;  %p487_p5 = scmp.lt.s32.totalorder %s135_s18, %s485_s4 }
  0x35   : > { %p482_p6 = pnand %p480_p1, %p468_p7  ;;  %p488_p9 = scmp.lt.s32.totalorder %s486_s5, %s479_s28 }
  0x37   : > { %p483_p3 = pneg %p482_p6  ;;  %p489_p4 = por %p488_p9, %p487_p5 }
  0x39   : > { %p490_p8 = pnand %p489_p4, %p483_p3 }
  0x3b   : > { %493 = shalt.err (!%p490_p8)
}
  0x3c   : > { %394 = dma.hbm_to_vmem [thread:$0]  (!%p672_p11), %s670_s8, 128, %s135_s18, %s124_s20  }
  0x3d   : > { %p766_p12 = scmp.ne.s32.totalorder %s761_s17, 0 }
  0x3e   : > { %s693_s6 = sand.u32 (!%p766_p12), 1, %s554_s10   ;;  %p767_p1 = scmp.ne.s32.totalorder (!%p766_p12), %s759_s15, 0 }
  0x3f   : > { %143 = sbr.rel (%p766_p12) target bundleno = 288 (0x120), region = 28  ;;  %s355_s7 = sshll.u32 (!%p766_p12), %s693_s6, 3 }
  0x40   : > { %s146_s14 = scalar_lea.sflag (!%p766_p12), [#allocation3], %s693_s6  ;;  %s149_s22 = scalar_lea.vmem (!%p766_p12), [#allocation2], %s355_s7 }
  0x44   : > { %537 = dma.done.wait (%p767_p1), %s146_s14, 128  }
  0x45   : > { %539 = vsyncadd (%p767_p1), %s146_s14, 4294967168  ;;  %p768_p4 = scmp.eq.s32.totalorder %s607_s13, 0 }
  0x47   : > { %541 = dma.done.wait (%p768_p4), [#allocation6], 512   ;;  %p769_p6 = pmov %p768_p4 }
  0x48   : > { %v568_v0 = vmov 0.0   ;;  %vm569_vm0 = vmmov 0   ;;  %v178_v1 = vld [vmem:[#allocation5 + $0x18] sm:$0xff]  ;;  %v177_v2 = vld [vmem:[#allocation5 + $0x10] sm:$0xff]  ;;  %v176_v3 = vld [vmem:[#allocation5 + $0x8] sm:$0xff]  ;;  %vm179_vm1 = vcmask 261120  }
  0x49   : > { %543 = vsyncadd (%p769_p6), [#allocation6], 4294966784  ;;  %368 = vmatprep.subr.mxu0 %v568_v0  ;;  %376 = vmatprep.mubr.msk.f32.mxu0 %vm569_vm0, %v568_v0  ;;  %v175_v4 = vld [vmem:[#allocation5] sm:$0xff]  ;;  %v174_v5 = vld [vmem:[%s149_s22] sm:$0xff]  ;;  %s173_s15 = scalar_lea.vmem [#allocation7], %s355_s7  ;;  %s360_s8 = sshll.u32 %s607_s13, 7 }
  0x4a   : > { %369 = vmatpush3.msra.mxu0 %v178_v1  ;;  %s268_s17 = sshll.u32 %s173_s15, 4  ;;  %s711_s20 = scalar_lea.hbm %s754_s2, %s360_s8  ;;  %s706_s17 = int_to_ptr.vmem [resolvable:$true] %s268_s17 }
  0x4b   : > { %370 = vmatprep.subr.mxu0 %v568_v0  ;;  %s255_s23 = scalar_lea.sflag [#allocation4], %s693_s6  ;;  %s494_s24 = scalar_lea.vmem %s706_s17, 128 }
  0x4c   : > { %371 = vmatpush3.msra.mxu0 %v177_v2  ;;  %p495_p8 = scmp.ne.s32.totalorder %s706_s17, %s494_s24  ;;  %p770_p3 = scmp.ne.s32.totalorder %s764_s30, 0 }
  0x4d   : > { %372 = vmatprep.subr.mxu0 %v568_v0  ;;  %s570_s13 = smov [#allocation7]  }
  0x4e   : > { %373 = vmatpush3.msra.mxu0 %v176_v3  ;;  %p496_p11 = pnand %p495_p8, %p770_p3  ;;  %s498_s25 = sshll.u32 %s570_s13, 4  ;;  %s499_s25 = int_to_ptr.vmem [resolvable:$false] %s498_s25 }
  0x4f   : > { %374 = vmatprep.subr.mxu0 %v568_v0  ;;  %s500_s26 = scalar_lea.vmem %s499_s25, 256  ;;  %p501_p10 = scmp.lt.s32.totalorder %s706_s17, %s499_s25 }
  0x50   : > { %375 = vmatpush3.msra.mxu0 %v175_v4  ;;  %p497_p7 = pneg %p496_p11  ;;  %p502_p2 = scmp.lt.s32.totalorder %s500_s26, %s494_s24 }
  0x51   : > { %377 = vmatmul.mubr.msk.f32.vlgmr.msra.gmra.mxu0 %vm179_vm1, %v174_v5 }
  0x52   : > { %p503_p13 = por %p502_p2, %p501_p10 }
  0x54   : > { %p504_p0 = pnand %p503_p13, %p497_p7 }
 0x111   : > { %v249_v6 = vpop.f32.mrf.mxu0 }
 0x112   : > { %253 = vst [vmem:[%s173_s15] sm:$0xff] %v249_v6 }
 0x113   : > { %v378_v7 = vpop.f32.mrf.mxu0 }
 0x114   : > { %507 = shalt.err (!%p504_p0)
}
 0x115   : > { %s508_s27 = scalar_lea.hbm %s711_s20, 128  ;;  %s512_s4 = scalar_lea.hbm %s754_s2, 256 }
 0x116   : > { %p509_p5 = scmp.ne.s32.totalorder %s711_s20, %s508_s27  ;;  %p513_p1 = scmp.lt.s32.totalorder %s711_s20, %s754_s2 }
 0x117   : > { %p514_p4 = scmp.lt.s32.totalorder %s512_s4, %s508_s27 }
 0x118   : > { %p510_p9 = pnand %p509_p5, %p770_p3 }
 0x119   : > { %p515_p6 = por %p514_p4, %p513_p1 }
 0x11a   : > { %p511_p12 = pneg %p510_p9 }
 0x11c   : > { %p516_p8 = pnand %p515_p6, %p511_p12 }
 0x11e   : > { %519 = shalt.err (!%p516_p8)
}
 0x11f   : > { %385 = dma.vmem_to_hbm [thread:$0]  (%p770_p3), %s706_s17, 128, %s711_s20, %s255_s23  }
 0x120 PF: > { %s280_s7 = sand.u32 1, %s550_s9   ;;  %p771_p11 = scmp.ne.s32.totalorder %s760_s16, 0 }
 0x121   : > { %p772_p7 = scmp.ge.s32.totalorder %s562_s12, 2  ;;  %s281_s14 = scalar_lea.sflag [#allocation4], %s280_s7 }
 0x123   : > { %p396_p10 = pnand %p772_p7, %p771_p11 }
 0x125   : > { %p397_p2 = pneg %p396_p10 }
 0x127   : > { %545 = dma.done.wait (%p397_p2), %s281_s14, 128  }
 0x128   : > { %547 = vsyncadd (%p397_p2), %s281_s14, 4294967168  ;;  %p16_p13 = scmp.ge.s32.totalorder %s640_s21, 4   ;;  %s773_s9 = smov %s554_s10 }
 0x129   : > { %s774_s10 = smov %s558_s11  ;;  %s775_s11 = smov %s657_s29 }
 0x12a   : > { %s776_s12 = smov %s640_s21  ;;  %18 = sbr.rel (!%p16_p13) target bundleno = 6 (0x6), region = 77 }
 0x12f   :  { %286 = vsyncpa [#allocation3], 1 }
 0x130   :  { %288 = vsyncpa [#allocation3 + $0x1], 1 }
 0x131   :  { %289 = vsyncpa [#allocation6], 1 }
 0x132   :  { %290 = vsyncpa [#allocation4], 1 }
 0x133   :  { %292 = vsyncpa [#allocation4 + $0x1], 1 }

</bundles_post_ra>
